<compile_context>
chip_gen: v6e
topology: v6e:2x2x1
jax: 0.10.0
libtpu: 0.0.40
codegen_flags: <defaults>
</compile_context>

<pallas_src>
import functools

import jax
import jax.numpy as jnp
from jax.experimental import pallas as pl
from jax.experimental.pallas import tpu as pltpu


def _round_up(n, m):
    return ((n + m - 1) // m) * m


# --------------------------------------------------------------------------- #
# Kernels
# --------------------------------------------------------------------------- #
def _tree_lstm_kernel(
    x_ref,        # (tile, in_dim)        f32
    cc_ref,       # (K, tile, mem)        f32   (children[k][0])
    ch_ref,       # (K, tile, mem)        f32   (children[k][1])
    w_x_ref,      # (in_dim, 4*mem)       compute dtype  [W_ioux | W_fx]
    w_iouh_ref,   # (mem, 3*mem)          compute dtype
    w_fh_ref,     # (mem, mem)            compute dtype
    b_ref,        # (1, 4*mem)            f32            [b_ioux | b_fx]
    c_out_ref,    # (tile, mem)           f32
    h_out_ref,    # (tile, mem)           h_dtype
    *,
    num_children: int,
    mem_dim: int,
    compute_dtype,
):
    m = mem_dim
    cd = compute_dtype
    x = x_ref[...].astype(cd)                                   # (tn, in_dim)

    # z = x @ [W_ioux | W_fx] + [b_ioux | b_fx]   (one MXU push, f32 accumulate)
    z = jnp.dot(x, w_x_ref[...], preferred_element_type=jnp.float32)
    z = z + b_ref[...]                                          # (tn, 4m) f32

    # iou += (sum_k child_c[k]) @ W_iouh          (second MXU push)
    s = jnp.sum(cc_ref[...], axis=0).astype(cd)                 # (tn, m)
    iou = z[:, :3 * m] + jnp.dot(s, w_iouh_ref[...],
                                 preferred_element_type=jnp.float32)

    i_g = jax.nn.sigmoid(iou[:, 0 * m:1 * m])
    o_g = jax.nn.sigmoid(iou[:, 1 * m:2 * m])
    u_g = jnp.tanh(iou[:, 2 * m:3 * m])
    fx = z[:, 3 * m:4 * m]                                      # f32

    c = i_g * u_g

    # All K forget-gate fh matmuls as ONE batched MXU push.
    ch = ch_ref[...].astype(cd)                                 # (K, tn, m)
    k, tn, _ = ch.shape
    fh = jnp.dot(ch.reshape(k * tn, m), w_fh_ref[...],
                 preferred_element_type=jnp.float32).reshape(k, tn, m)
    c = c + jnp.sum(jax.nn.sigmoid(fx[None, :, :] * fh), axis=0)

    h = o_g * jnp.tanh(c)
    c_out_ref[...] = c
    h_out_ref[...] = h.astype(h_out_ref.dtype)


def _leaf_lstm_kernel(
    x_ref,        # (tile, in_dim)   f32
    w_x_ref,      # (in_dim, 4*mem)  compute dtype
    b_ref,        # (1, 4*mem)       f32
    c_out_ref,    # (tile, mem)      f32
    h_out_ref,    # (tile, mem)      h_dtype
    *,
    mem_dim: int,
    compute_dtype,
):
    m = mem_dim
    x = x_ref[...].astype(compute_dtype)
    z = jnp.dot(x, w_x_ref[...], preferred_element_type=jnp.float32) + b_ref[...]
    i_g = jax.nn.sigmoid(z[:, 0 * m:1 * m])
    o_g = jax.nn.sigmoid(z[:, 1 * m:2 * m])
    u_g = jnp.tanh(z[:, 2 * m:3 * m])
    c = i_g * u_g
    h = o_g * jnp.tanh(c)
    c_out_ref[...] = c
    h_out_ref[...] = h.astype(h_out_ref.dtype)


# --------------------------------------------------------------------------- #
# One-time weight preparation (hoisted out of the per-call path)
# --------------------------------------------------------------------------- #
def prepare_params(params, compute_dtype=jnp.bfloat16):
    """Fuse / transpose / cast the PyTorch-convention weights ONCE per model."""
    cd = jnp.dtype(compute_dtype)
    w_ioux = params["w_ioux"].T                       # (in_dim, 3*mem)
    w_fx = params["w_fx"].T                           # (in_dim, mem)
    w_x = jnp.concatenate([w_ioux, w_fx], axis=1).astype(cd)     # (in_dim, 4*mem)
    w_iouh = params["w_iouh"].T.astype(cd)                       # (mem, 3*mem)
    w_fh = params["w_fh"].T.astype(cd)                           # (mem, mem)
    b_all = jnp.concatenate([params["b_ioux"], params["b_fx"]]).reshape(1, -1)
    b_all = b_all.astype(jnp.float32)                            # (1, 4*mem)
    return {
        "w_x": w_x, "w_iouh": w_iouh, "w_fh": w_fh, "b_all": b_all,
        "in_dim": int(params["w_ioux"].shape[1]),
        "mem_dim": int(params["w_fh"].shape[0]),
        "compute_dtype": cd,
    }


# --------------------------------------------------------------------------- #
# Wrapper
# --------------------------------------------------------------------------- #
def tree_lstm_cell(x, child_c, child_h, prepared, *, tile_n=512,
                   h_dtype=jnp.bfloat16):
    """Pallas forward of LSTMCell.forward(input, children).

    x        : (N, in_dim) f32   -- N tree nodes processed together
    child_c  : (K, N, mem) f32   -- stacked children[k][0]   (K may be 0)
    child_h  : (K, N, mem) f32   -- stacked children[k][1]
    prepared : output of prepare_params()
    returns  : (c, h); c is (N, mem) f32, h is (N, mem) h_dtype
    """
    N_orig, in_dim = x.shape
    K = int(child_c.shape[0])
    mem = prepared["mem_dim"]
    cd = prepared["compute_dtype"]
    assert in_dim == prepared["in_dim"]
    assert mem % 128 == 0, "mem_dim must be a multiple of 128 (lane width)"

    N = N_orig
    if N < 8:                                   # tiny batches only: pad to 1 sublane group
        pad = 8 - N
        x = jnp.pad(x, ((0, pad), (0, 0)))
        if K > 0:
            child_c = jnp.pad(child_c, ((0, 0), (0, pad), (0, 0)))
            child_h = jnp.pad(child_h, ((0, 0), (0, pad), (0, 0)))
        N = 8

    h_dtype = jnp.dtype(h_dtype)
    # Round the tile to the output sublane pack (16 for bf16 h outputs).
    pack = 16 if (h_dtype.itemsize == 2 and N >= 16) else 8
    cap = max((min(_round_up(tile_n, pack), N) // pack) * pack, pack)
    # v7x has 2 TensorCores: prefer >= 2 "parallel" grid steps when N allows.
    tile = min(cap, max(_round_up(pl.cdiv(N, 2), pack), pack))
    grid = (pl.cdiv(N, tile),)                  # partial last block handled by Pallas

    w_x, w_iouh, w_fh, b_all = (prepared["w_x"], prepared["w_iouh"],
                                prepared["w_fh"], prepared["b_all"])

    # ---- explicit VMEM budget (v7x: 64 MiB physical, 32 MiB default scoped) ----
    cd_b = cd.itemsize
    blk_bytes = (tile * in_dim * 4
                 + 2 * K * tile * mem * 4
                 + tile * mem * 4 + tile * mem * h_dtype.itemsize)
    w_bytes = (w_x.size + w_iouh.size + w_fh.size) * cd_b + b_all.size * 4
    interm = 6 * tile * 4 * mem * 4             # z / iou / gate intermediates slack
    vmem_limit = int(min(max(2 * blk_bytes + w_bytes + interm, 32 << 20), 64 << 20))

    flops = 2 * N * in_dim * 4 * mem
    transcendentals = 4 * N * mem
    bytes_accessed = x.size * 4 + w_bytes + N * mem * (4 + h_dtype.itemsize)
    if K > 0:
        flops += 2 * N * mem * 3 * mem + 2 * K * N * mem * mem
        transcendentals += K * N * mem
        bytes_accessed += 2 * K * N * mem * 4

    weight_specs = [
        # constant block indices -> weights stay VMEM-resident across grid steps
        pl.BlockSpec((in_dim, 4 * mem), lambda i: (0, 0)),   # w_x
        pl.BlockSpec((mem, 3 * mem), lambda i: (0, 0)),      # w_iouh
        pl.BlockSpec((mem, mem), lambda i: (0, 0)),          # w_fh
        pl.BlockSpec((1, 4 * mem), lambda i: (0, 0)),        # b_all
    ]
    out_specs = (pl.BlockSpec((tile, mem), lambda i: (i, 0)),
                 pl.BlockSpec((tile, mem), lambda i: (i, 0)))
    out_shape = (jax.ShapeDtypeStruct((N, mem), jnp.float32),
                 jax.ShapeDtypeStruct((N, mem), h_dtype))
    cparams = pltpu.CompilerParams(dimension_semantics=("parallel",),
                                   vmem_limit_bytes=vmem_limit)
    cost = pl.CostEstimate(flops=flops, transcendentals=transcendentals,
                           bytes_accessed=bytes_accessed)

    if K > 0:
        kernel = functools.partial(_tree_lstm_kernel, num_children=K,
                                   mem_dim=mem, compute_dtype=cd)
        c_out, h_out = pl.pallas_call(
            kernel,
            out_shape=out_shape,
            grid=grid,
            in_specs=[
                pl.BlockSpec((tile, in_dim), lambda i: (i, 0)),
                pl.BlockSpec((K, tile, mem), lambda i: (0, i, 0)),
                pl.BlockSpec((K, tile, mem), lambda i: (0, i, 0)),
            ] + weight_specs,
            out_specs=out_specs,
            compiler_params=cparams,
            cost_estimate=cost,
        )(x, child_c, child_h, w_x, w_iouh, w_fh, b_all)
    else:
        # Leaf specialization: no dummy-children DMA, no zero reduction.
        kernel = functools.partial(_leaf_lstm_kernel, mem_dim=mem,
                                   compute_dtype=cd)
        c_out, h_out = pl.pallas_call(
            kernel,
            out_shape=out_shape,
            grid=grid,
            in_specs=[
                pl.BlockSpec((tile, in_dim), lambda i: (i, 0)),
                pl.BlockSpec((in_dim, 4 * mem), lambda i: (0, 0)),
                pl.BlockSpec((1, 4 * mem), lambda i: (0, 0)),
            ],
            out_specs=out_specs,
            compiler_params=cparams,
            cost_estimate=cost,
        )(x, w_x, b_all)

    if N != N_orig:
        c_out = c_out[:N_orig]
        h_out = h_out[:N_orig]
    return c_out, h_out


# --------------------------------------------------------------------------- #
# Reference + test harness
# --------------------------------------------------------------------------- #
def make_params(key, in_dim, mem_dim):
    """Deterministic synthetic parameters in PyTorch nn.Linear convention:
    weight (out_features, in_features), bias (out_features,)."""
    ks = jax.random.split(key, 6)
    scale = 0.1
    return {
        "w_ioux": scale * jax.random.normal(ks[0], (3 * mem_dim, in_dim), jnp.float32),
        "b_ioux": scale * jax.random.normal(ks[1], (3 * mem_dim,), jnp.float32),
        "w_iouh": scale * jax.random.normal(ks[2], (3 * mem_dim, mem_dim), jnp.float32),
        "w_fx": scale * jax.random.normal(ks[3], (mem_dim, in_dim), jnp.float32),
        "b_fx": scale * jax.random.normal(ks[4], (mem_dim,), jnp.float32),
        "w_fh": scale * jax.random.normal(ks[5], (mem_dim, mem_dim), jnp.float32),
    }


def reference_forward(x, child_c, child_h, params, compute_dtype=jnp.float32):
    """Pure-JAX replica of the PyTorch forward (same MXU operand precision)."""
    cd = jnp.dtype(compute_dtype)
    f32 = jnp.float32
    mem = params["w_fh"].shape[0]
    K = child_c.shape[0]

    xq = x.astype(cd)
    iou = jnp.dot(xq, params["w_ioux"].astype(cd).T,
                  preferred_element_type=f32) + params["b_ioux"]
    if K > 0:
        s = jnp.sum(child_c, axis=0).astype(cd)
        iou = iou + jnp.dot(s, params["w_iouh"].astype(cd).T,
                            preferred_element_type=f32)
    i = jax.nn.sigmoid(iou[:, :mem])
    o = jax.nn.sigmoid(iou[:, mem:2 * mem])
    u = jnp.tanh(iou[:, 2 * mem:])
    c = i * u
    fx = jnp.dot(xq, params["w_fx"].astype(cd).T,
                 preferred_element_type=f32) + params["b_fx"]
    for k in range(K):
        fh = jnp.dot(child_h[k].astype(cd), params["w_fh"].astype(cd).T,
                     preferred_element_type=f32)
        c = c + jax.nn.sigmoid(fx * fh)
    h = o * jnp.tanh(c)
    return c, h


if __name__ == "__main__":
    IN_DIM, MEM_DIM = 64, 128

    key = jax.random.PRNGKey(0)
    k_par, k_x, k_cc, k_ch, k_x2, k_cc2, k_ch2 = jax.random.split(key, 7)
    params = make_params(k_par, IN_DIM, MEM_DIM)

    prep_bf16 = prepare_params(params, compute_dtype=jnp.bfloat16)
    prep_f32 = prepare_params(params, compute_dtype=jnp.float32)

    # --- test 1: tiny node batch, 2 children, bf16 MXU operands + bf16 h out ---
    N, K = 8, 2
    x = jax.random.normal(k_x, (N, IN_DIM), jnp.float32)
    child_c = jax.random.normal(k_cc, (K, N, MEM_DIM), jnp.float32)
    child_h = jax.random.normal(k_ch, (K, N, MEM_DIM), jnp.float32)

    c, h = tree_lstm_cell(x, child_c, child_h, prep_bf16, h_dtype=jnp.bfloat16)
    jax.block_until_ready((c, h))
    c_ref, h_ref = reference_forward(x, child_c, child_h, params,
                                     compute_dtype=jnp.bfloat16)
    assert jnp.allclose(c, c_ref, atol=3e-2, rtol=3e-2)
    assert jnp.allclose(h.astype(jnp.float32), h_ref, atol=3e-2, rtol=3e-2)

    # --- test 2: gridded batch (partial last block), f32, 3 children, f32 h ---
    N2, K2 = 40, 3
    x2 = jax.random.normal(k_x2, (N2, IN_DIM), jnp.float32)
    cc2 = jax.random.normal(k_cc2, (K2, N2, MEM_DIM), jnp.float32)
    ch2 = jax.random.normal(k_ch2, (K2, N2, MEM_DIM), jnp.float32)
    c2, h2 = tree_lstm_cell(x2, cc2, ch2, prep_f32, tile_n=16,
                            h_dtype=jnp.float32)
    jax.block_until_ready((c2, h2))
    c2_ref, h2_ref = reference_forward(x2, cc2, ch2, params,
                                       compute_dtype=jnp.float32)
    assert jnp.allclose(c2, c2_ref, atol=5e-4, rtol=5e-4)
    assert jnp.allclose(h2, h2_ref, atol=5e-4, rtol=5e-4)

    # --- test 3: leaf batch (no children) -> specialized kernel ---
    empty_c = jnp.zeros((0, N, MEM_DIM), jnp.float32)
    empty_h = jnp.zeros((0, N, MEM_DIM), jnp.float32)
    c3, h3 = tree_lstm_cell(x, empty_c, empty_h, prep_f32, h_dtype=jnp.float32)
    jax.block_until_ready((c3, h3))
    c3_ref, h3_ref = reference_forward(x, empty_c, empty_h, params,
                                       compute_dtype=jnp.float32)
    assert jnp.allclose(c3, c3_ref, atol=5e-4, rtol=5e-4)
    assert jnp.allclose(h3, h3_ref, atol=5e-4, rtol=5e-4)

    print("KERNEL_OK")
</pallas_src>

<mosaic_0001>
module attributes {stable_mosaic.version = 11 : i64} {
  func.func @_tree_lstm_kernel(%arg0: i32, %arg1: memref<8x64xf32, #tpu.memory_space<vmem>>, %arg2: memref<2x8x128xf32, #tpu.memory_space<vmem>>, %arg3: memref<2x8x128xf32, #tpu.memory_space<vmem>>, %arg4: memref<64x512xbf16, #tpu.memory_space<vmem>>, %arg5: memref<128x384xbf16, #tpu.memory_space<vmem>>, %arg6: memref<128x128xbf16, #tpu.memory_space<vmem>>, %arg7: memref<1x512xf32, #tpu.memory_space<vmem>>, %arg8: memref<8x128xf32, #tpu.memory_space<vmem>>, %arg9: memref<8x128xbf16, #tpu.memory_space<vmem>>) attributes {dimension_semantics = [#tpu.dimension_semantics<parallel>], iteration_bounds = array<i64: 1>, scalar_prefetch = 0 : i64, scratch_operands = 0 : i64, tpu.core_type = #tpu.core_type<tc>, window_params = [{transform_indices = @transform_0, window_bounds = array<i64: 8, 64>}, {transform_indices = @transform_1, window_bounds = array<i64: 2, 8, 128>}, {transform_indices = @transform_2, window_bounds = array<i64: 2, 8, 128>}, {pipeline_mode = #tpu.pipeline_mode<synchronous>, transform_indices = @transform_3, window_bounds = array<i64: 64, 512>}, {pipeline_mode = #tpu.pipeline_mode<synchronous>, transform_indices = @transform_4, window_bounds = array<i64: 128, 384>}, {pipeline_mode = #tpu.pipeline_mode<synchronous>, transform_indices = @transform_5, window_bounds = array<i64: 128, 128>}, {pipeline_mode = #tpu.pipeline_mode<synchronous>, transform_indices = @transform_6, window_bounds = array<i64: 1, 512>}, {transform_indices = @transform_7, window_bounds = array<i64: 8, 128>}, {transform_indices = @transform_8, window_bounds = array<i64: 8, 128>}]} {
    %c0 = arith.constant 0 : index
    %c0_0 = arith.constant 0 : index
    %0 = vector.load %arg1[%c0, %c0_0] : memref<8x64xf32, #tpu.memory_space<vmem>>, vector<8x64xf32>
    %1 = arith.truncf %0 : vector<8x64xf32> to vector<8x64xbf16>
    %c0_1 = arith.constant 0 : index
    %c0_2 = arith.constant 0 : index
    %2 = vector.load %arg4[%c0_1, %c0_2] : memref<64x512xbf16, #tpu.memory_space<vmem>>, vector<64x512xbf16>
    %cst = arith.constant dense<0.000000e+00> : vector<8x512xf32>
    %3 = tpu.matmul %1, %2, %cst {dimension_numbers = #tpu.dot_dimension_numbers<[1], [0], [0], [1], [0, 0, 1, 1], [], []>} : vector<8x64xbf16>, vector<64x512xbf16>, vector<8x512xf32> -> vector<8x512xf32>
    %c0_3 = arith.constant 0 : index
    %c0_4 = arith.constant 0 : index
    %4 = vector.load %arg7[%c0_3, %c0_4] : memref<1x512xf32, #tpu.memory_space<vmem>>, vector<1x512xf32>
    %5 = vector.broadcast %4 : vector<1x512xf32> to vector<8x512xf32>
    %6 = arith.addf %3, %5 : vector<8x512xf32>
    %c0_5 = arith.constant 0 : index
    %c0_6 = arith.constant 0 : index
    %c0_7 = arith.constant 0 : index
    %7 = vector.load %arg2[%c0_5, %c0_6, %c0_7] : memref<2x8x128xf32, #tpu.memory_space<vmem>>, vector<2x8x128xf32>
    %cst_8 = arith.constant dense<0.000000e+00> : vector<8x128xf32>
    %8 = vector.multi_reduction <add>, %7, %cst_8 [0] : vector<2x8x128xf32> to vector<8x128xf32>
    %9 = arith.truncf %8 : vector<8x128xf32> to vector<8x128xbf16>
    %10 = vector.extract_strided_slice %6 {offsets = [0, 0], sizes = [8, 384], strides = [1, 1]} : vector<8x512xf32> to vector<8x384xf32>
    %c0_9 = arith.constant 0 : index
    %c0_10 = arith.constant 0 : index
    %11 = vector.load %arg5[%c0_9, %c0_10] : memref<128x384xbf16, #tpu.memory_space<vmem>>, vector<128x384xbf16>
    %cst_11 = arith.constant dense<0.000000e+00> : vector<8x384xf32>
    %12 = tpu.matmul %9, %11, %cst_11 {dimension_numbers = #tpu.dot_dimension_numbers<[1], [0], [0], [1], [0, 0, 1, 1], [], []>} : vector<8x128xbf16>, vector<128x384xbf16>, vector<8x384xf32> -> vector<8x384xf32>
    %13 = arith.addf %10, %12 : vector<8x384xf32>
    %14 = vector.extract_strided_slice %13 {offsets = [0, 0], sizes = [8, 128], strides = [1, 1]} : vector<8x384xf32> to vector<8x128xf32>
    %15 = arith.negf %14 : vector<8x128xf32>
    %16 = math.exp %15 : vector<8x128xf32>
    %cst_12 = arith.constant 1.000000e+00 : f32
    %17 = vector.broadcast %cst_12 : f32 to vector<8x128xf32>
    %18 = arith.addf %17, %16 : vector<8x128xf32>
    %19 = arith.divf %17, %18 : vector<8x128xf32>
    %20 = vector.extract_strided_slice %13 {offsets = [0, 128], sizes = [8, 128], strides = [1, 1]} : vector<8x384xf32> to vector<8x128xf32>
    %21 = arith.negf %20 : vector<8x128xf32>
    %22 = math.exp %21 : vector<8x128xf32>
    %cst_13 = arith.constant 1.000000e+00 : f32
    %23 = vector.broadcast %cst_13 : f32 to vector<8x128xf32>
    %24 = arith.addf %23, %22 : vector<8x128xf32>
    %25 = arith.divf %23, %24 : vector<8x128xf32>
    %26 = vector.extract_strided_slice %13 {offsets = [0, 256], sizes = [8, 128], strides = [1, 1]} : vector<8x384xf32> to vector<8x128xf32>
    %27 = math.tanh %26 : vector<8x128xf32>
    %28 = vector.extract_strided_slice %6 {offsets = [0, 384], sizes = [8, 128], strides = [1, 1]} : vector<8x512xf32> to vector<8x128xf32>
    %29 = arith.mulf %19, %27 : vector<8x128xf32>
    %c0_14 = arith.constant 0 : index
    %c0_15 = arith.constant 0 : index
    %c0_16 = arith.constant 0 : index
    %30 = vector.load %arg3[%c0_14, %c0_15, %c0_16] : memref<2x8x128xf32, #tpu.memory_space<vmem>>, vector<2x8x128xf32>
    %31 = arith.truncf %30 : vector<2x8x128xf32> to vector<2x8x128xbf16>
    %32 = vector.shape_cast %31 : vector<2x8x128xbf16> to vector<16x128xbf16>
    %c0_17 = arith.constant 0 : index
    %c0_18 = arith.constant 0 : index
    %33 = vector.load %arg6[%c0_17, %c0_18] : memref<128x128xbf16, #tpu.memory_space<vmem>>, vector<128x128xbf16>
    %cst_19 = arith.constant dense<0.000000e+00> : vector<16x128xf32>
    %34 = tpu.matmul %32, %33, %cst_19 {dimension_numbers = #tpu.dot_dimension_numbers<[1], [0], [0], [1], [0, 0, 1, 1], [], []>} : vector<16x128xbf16>, vector<128x128xbf16>, vector<16x128xf32> -> vector<16x128xf32>
    %35 = vector.shape_cast %34 : vector<16x128xf32> to vector<2x8x128xf32>
    %36 = vector.shape_cast %28 : vector<8x128xf32> to vector<1x8x128xf32>
    %37 = vector.broadcast %36 : vector<1x8x128xf32> to vector<2x8x128xf32>
    %38 = arith.mulf %37, %35 : vector<2x8x128xf32>
    %39 = arith.negf %38 : vector<2x8x128xf32>
    %40 = math.exp %39 : vector<2x8x128xf32>
    %cst_20 = arith.constant 1.000000e+00 : f32
    %41 = vector.broadcast %cst_20 : f32 to vector<2x8x128xf32>
    %42 = arith.addf %41, %40 : vector<2x8x128xf32>
    %43 = arith.divf %41, %42 : vector<2x8x128xf32>
    %cst_21 = arith.constant dense<0.000000e+00> : vector<8x128xf32>
    %44 = vector.multi_reduction <add>, %43, %cst_21 [0] : vector<2x8x128xf32> to vector<8x128xf32>
    %45 = arith.addf %29, %44 : vector<8x128xf32>
    %46 = math.tanh %45 : vector<8x128xf32>
    %47 = arith.mulf %25, %46 : vector<8x128xf32>
    %c0_22 = arith.constant 0 : index
    %c0_23 = arith.constant 0 : index
    %48 = vector.load %arg8[%c0_22, %c0_23] : memref<8x128xf32, #tpu.memory_space<vmem>>, vector<8x128xf32>
    tpu.vector_store %arg8[%c0_22, %c0_23], %45 {strides = array<i32>} : memref<8x128xf32, #tpu.memory_space<vmem>>, vector<8x128xf32>,
    %49 = arith.truncf %47 : vector<8x128xf32> to vector<8x128xbf16>
    %c0_24 = arith.constant 0 : index
    %c0_25 = arith.constant 0 : index
    %50 = vector.load %arg9[%c0_24, %c0_25] : memref<8x128xbf16, #tpu.memory_space<vmem>>, vector<8x128xbf16>
    tpu.vector_store %arg9[%c0_24, %c0_25], %49 {strides = array<i32>} : memref<8x128xbf16, #tpu.memory_space<vmem>>, vector<8x128xbf16>,
    return
  }
  func.func @transform_0(%arg0: i32) -> (i32, i32) {
    %c0_i32 = arith.constant 0 : i32
    %c0_i32_0 = arith.constant 0 : i32
    return %arg0, %c0_i32 : i32, i32
  }
  func.func @transform_1(%arg0: i32) -> (i32, i32, i32) {
    %c0_i32 = arith.constant 0 : i32
    %c0_i32_0 = arith.constant 0 : i32
    %c0_i32_1 = arith.constant 0 : i32
    return %c0_i32, %arg0, %c0_i32_0 : i32, i32, i32
  }
  func.func @transform_2(%arg0: i32) -> (i32, i32, i32) {
    %c0_i32 = arith.constant 0 : i32
    %c0_i32_0 = arith.constant 0 : i32
    %c0_i32_1 = arith.constant 0 : i32
    return %c0_i32, %arg0, %c0_i32_0 : i32, i32, i32
  }
  func.func @transform_3(%arg0: i32) -> (i32, i32) {
    %c0_i32 = arith.constant 0 : i32
    %c0_i32_0 = arith.constant 0 : i32
    %c0_i32_1 = arith.constant 0 : i32
    return %c0_i32, %c0_i32_0 : i32, i32
  }
  func.func @transform_4(%arg0: i32) -> (i32, i32) {
    %c0_i32 = arith.constant 0 : i32
    %c0_i32_0 = arith.constant 0 : i32
    %c0_i32_1 = arith.constant 0 : i32
    return %c0_i32, %c0_i32_0 : i32, i32
  }
  func.func @transform_5(%arg0: i32) -> (i32, i32) {
    %c0_i32 = arith.constant 0 : i32
    %c0_i32_0 = arith.constant 0 : i32
    %c0_i32_1 = arith.constant 0 : i32
    return %c0_i32, %c0_i32_0 : i32, i32
  }
  func.func @transform_6(%arg0: i32) -> (i32, i32) {
    %c0_i32 = arith.constant 0 : i32
    %c0_i32_0 = arith.constant 0 : i32
    %c0_i32_1 = arith.constant 0 : i32
    return %c0_i32, %c0_i32_0 : i32, i32
  }
  func.func @transform_7(%arg0: i32) -> (i32, i32) {
    %c0_i32 = arith.constant 0 : i32
    %c0_i32_0 = arith.constant 0 : i32
    return %arg0, %c0_i32 : i32, i32
  }
  func.func @transform_8(%arg0: i32) -> (i32, i32) {
    %c0_i32 = arith.constant 0 : i32
    %c0_i32_0 = arith.constant 0 : i32
    return %arg0, %c0_i32 : i32, i32
  }
}

</mosaic_0001>

<bundles_post_ra>
// kernel: tpu_custom_call.1
= control target key start
LH: loop header
LB: loop body
LE: loop exit
PB: predicated region body
PF: predicated region fallthrough
CT: control target
= control target key end

     0   :  { %14 = vsyncpa [#allocation3], 0  ;;  %s1235_s0 = inlined_call_operand.hbm [shape: f32[8,64], index: 0, kind: input, shape index: {}]   ;;  %s1236_s1 = inlined_call_operand.hbm [shape: f32[2,8,128], index: 1, kind: input, shape index: {}]   ;;  %s1237_s2 = inlined_call_operand.hbm [shape: f32[2,8,128], index: 2, kind: input, shape index: {}]   ;;  %s1238_s3 = inlined_call_operand.hbm [shape: bf16[64,512], index: 3, kind: input, shape index: {}]   ;;  %s1239_s4 = inlined_call_operand.hbm [shape: bf16[128,384], index: 4, kind: input, shape index: {}]   ;;  %s1240_s5 = inlined_call_operand.hbm [shape: bf16[128,128], index: 5, kind: input, shape index: {}]   ;;  %s1241_s6 = inlined_call_operand.vmem [shape: f32[1,512], index: 6, kind: input, shape index: {}]   ;;  %s1242_s7 = inlined_call_operand.hbm [shape: f32[8,128], index: 7, kind: output, shape index: {0}]   ;;  %s1243_s8 = inlined_call_operand.hbm [shape: bf16[8,128], index: 8, kind: output, shape index: {1}]  }
   0x1   :  { %15 = vsyncpa [#allocation6], 0 }
   0x2   :  { %16 = vsyncpa [#allocation9], 0 }
   0x3   :  { %17 = vsyncpa [#allocation12], 0 }
   0x4   :  { %18 = vsyncpa [#allocation4], 0 }
   0x5   :  { %19 = vsyncpa [#allocation15], 0  ;;  %s1136_s27 = smov [#allocation5]  }
   0x6   :  { %s35_s28 = sshll.u32 %s1136_s27, 4  ;;  %s36_s28 = int_to_ptr.vmem [resolvable:$true] %s35_s28 }
   0x7   :  { %s972_s29 = scalar_lea.vmem %s36_s28, 256  ;;  %p977_p1 = scmp.lt.s32.totalorder %s36_s28, %s36_s28 }
   0x8   :  { %p973_p0 = scmp.ne.s32.totalorder %s36_s28, %s972_s29  ;;  %p978_p2 = scmp.lt.s32.totalorder %s972_s29, %s972_s29 }
   0xa   :  { %p979_p3 = por %p978_p2, %p977_p1 }
   0xc   :  { %p980_p4 = pnand %p979_p3, %p973_p0 }
   0xe   :  { %983 = shalt.err (!%p980_p4)
}
   0xf   :  { %s1137_s30 = smov 128   ;;  %s1138_s9 = smov 8  }
  0x10   :  { %41 = dma.hbm_to_vmem [thread:$0]  %s1236_s1, 256, %s36_s28, [#allocation6], %s1137_s30, %s1137_s30, %s1138_s9  }
  0x11   :  { %s1139_s12 = smov [#allocation8]  }
  0x12   :  { %s59_s13 = sshll.u32 %s1139_s12, 4  ;;  %s60_s13 = int_to_ptr.vmem [resolvable:$true] %s59_s13 }
  0x13   :  { %s992_s14 = scalar_lea.vmem %s60_s13, 2048  ;;  %p997_p6 = scmp.lt.s32.totalorder %s60_s13, %s60_s13 }
  0x14   :  { %p993_p5 = scmp.ne.s32.totalorder %s60_s13, %s992_s14  ;;  %p998_p7 = scmp.lt.s32.totalorder %s992_s14, %s992_s14 }
  0x16   :  { %p999_p8 = por %p998_p7, %p997_p6 }
  0x18   :  { %p1000_p9 = pnand %p999_p8, %p993_p5 }
  0x1a   :  { %1003 = shalt.err (!%p1000_p9)
}
  0x1b   :  { %s1140_s15 = smov 256   ;;  %s1141_s16 = smov 16  }
  0x1c   :  { %65 = dma.hbm_to_vmem [thread:$0]  %s1238_s3, 2048, %s60_s13, [#allocation9], %s1140_s15, %s1140_s15, %s1141_s16  }
  0x1d   :  { %s1142_s19 = smov [#allocation2]   ;;  %s1143_s21 = smov [#allocation7]  }
  0x1e   :  { %s26_s20 = sshll.u32 %s1142_s19, 4  ;;  %s47_s1 = sshll.u32 %s1143_s21, 4  ;;  %s27_s20 = int_to_ptr.vmem [resolvable:$true] %s26_s20  ;;  %s48_s1 = int_to_ptr.vmem [resolvable:$true] %s47_s1 }
  0x1f   :  { %s1012_s22 = scalar_lea.vmem %s27_s20, 128  ;;  %p1017_p11 = scmp.lt.s32.totalorder %s27_s20, %s27_s20 }
  0x20   :  { %p1013_p10 = scmp.ne.s32.totalorder %s27_s20, %s1012_s22  ;;  %p1018_p12 = scmp.lt.s32.totalorder %s1012_s22, %s1012_s22 }
  0x22   :  { %p1019_p13 = por %p1018_p12, %p1017_p11 }
  0x24   :  { %p1020_p0 = pnand %p1019_p13, %p1013_p10 }
  0x26   :  { %1023 = shalt.err (!%p1020_p0)
}
  0x27   :  { %29 = dma.hbm_to_vmem [thread:$0]  %s1235_s0, 128, %s27_s20, [#allocation3]  }
  0x28   :  { %s1032_s25 = scalar_lea.vmem %s48_s1, 256  ;;  %p1037_p2 = scmp.lt.s32.totalorder %s48_s1, %s48_s1 }
  0x29   :  { %p1033_p1 = scmp.ne.s32.totalorder %s48_s1, %s1032_s25  ;;  %p1038_p3 = scmp.lt.s32.totalorder %s1032_s25, %s1032_s25 }
  0x2b   :  { %p1039_p4 = por %p1038_p3, %p1037_p2 }
  0x2d   :  { %p1040_p5 = pnand %p1039_p4, %p1033_p1 }
  0x2f   :  { %1043 = shalt.err (!%p1040_p5)
}
  0x30   :  { %53 = dma.hbm_to_vmem [thread:$0]  %s1237_s2, 256, %s48_s1, [#allocation6], %s1137_s30, %s1137_s30, %s1138_s9  }
  0x31   :  { %s1144_s27 = smov [#allocation10]  }
  0x32   :  { %s71_s28 = sshll.u32 %s1144_s27, 4  ;;  %s72_s28 = int_to_ptr.vmem [resolvable:$true] %s71_s28 }
  0x33   :  { %s1052_s29 = scalar_lea.vmem %s72_s28, 3072  ;;  %p1057_p7 = scmp.lt.s32.totalorder %s72_s28, %s72_s28 }
  0x34   :  { %p1053_p6 = scmp.ne.s32.totalorder %s72_s28, %s1052_s29  ;;  %p1058_p8 = scmp.lt.s32.totalorder %s1052_s29, %s1052_s29 }
  0x36   :  { %p1059_p9 = por %p1058_p8, %p1057_p7 }
  0x38   :  { %p1060_p10 = pnand %p1059_p9, %p1053_p6 }
  0x3a   :  { %1063 = shalt.err (!%p1060_p10)
}
  0x3b   :  { %s1145_s0 = smov 192   ;;  %s1146_s10 = smov 12  }
  0x3c   :  { %77 = dma.hbm_to_vmem [thread:$0]  %s1239_s4, 3072, %s72_s28, [#allocation9], %s1145_s0, %s1145_s0, %s1146_s10  }
  0x3d   :  { %s1147_s13 = smov [#allocation11]  }
  0x3e   :  { %s83_s14 = sshll.u32 %s1147_s13, 4  ;;  %s84_s14 = int_to_ptr.vmem [resolvable:$true] %s83_s14 }
  0x3f   :  { %s1072_s2 = scalar_lea.vmem %s84_s14, 1024  ;;  %p1077_p12 = scmp.lt.s32.totalorder %s84_s14, %s84_s14 }
  0x40   :  { %p1073_p11 = scmp.ne.s32.totalorder %s84_s14, %s1072_s2  ;;  %p1078_p13 = scmp.lt.s32.totalorder %s1072_s2, %s1072_s2 }
  0x42   :  { %p1079_p0 = por %p1078_p13, %p1077_p12 }
  0x44   :  { %p1080_p1 = pnand %p1079_p0, %p1073_p11 }
  0x46   :  { %1083 = shalt.err (!%p1080_p1)
}
  0x47   :  { %s1148_s30 = smov 64   ;;  %s1149_s9 = smov 4  }
  0x48   :  { %89 = dma.hbm_to_vmem [thread:$0]  %s1240_s5, 1024, %s84_s14, [#allocation12], %s1148_s30, %s1148_s30, %s1149_s9  }
  0x49   :  { %1124 = dma.done.wait [#allocation3], 128  }
  0x4a   :  { %1125 = vsyncadd [#allocation3], 4294967168 }
  0x4b   :  { %1126 = dma.done.wait [#allocation6], 512  }
  0x4c   :  { %1127 = vsyncadd [#allocation6], 4294966784 }
  0x4d   :  { %1128 = dma.done.wait [#allocation9], 5120  }
  0x4e   :  { %1129 = vsyncadd [#allocation9], 4294962176 }
  0x4f   :  { %1130 = dma.done.wait [#allocation12], 1024  }
  0x50   :  { %1131 = vsyncadd [#allocation12], 4294966272  ;;  %v1150_v0 = vmov 0   ;;  %v880_v1 = vld [vmem:[#allocation8 + $0x64] ss:$16 sps:$4 sm:$0xff]   ;;  %v111_v19 = vld [vmem:[#allocation2] sm:$0xff] }
  0x51   :  { %267 = vmatprep.mubr.bf16.mxu1 %v1150_v0  ;;  %513 = vmatprep.mubr.bf16.mxu0 %v1150_v0  ;;  %v882_v2 = vld [vmem:[#allocation10 + $0xac] ss:$12 sps:$4 sm:$0xff]   ;;  %v884_v3 = vld [vmem:[#allocation8 + $0x60] ss:$16 sps:$4 sm:$0xff]   ;;  %v885_v4 = vld [vmem:[#allocation10 + $0xa8] ss:$12 sps:$4 sm:$0xff]   ;;  %v112_v21 = vpack.c.bf16 %v111_v19, %v111_v19 }
  0x52   :  { %243 = vmatprep.subr.bf16.mxu1 %v880_v1  ;;  %481 = vmatprep.subr.bf16.mxu0 %v882_v2  ;;  %v886_v5 = vld [vmem:[#allocation8 + $0x44] ss:$16 sps:$4 sm:$0xff]   ;;  %v890_v7 = vld [vmem:[#allocation8 + $0x40] ss:$16 sps:$4 sm:$0xff]   ;;  %v894_v10 = vld [vmem:[#allocation10 + $0x7c] ss:$12 sps:$4 sm:$0xff]  }
  0x53   :  { %244 = vmatpush1.bf16.msra.mxu1 %v884_v3  ;;  %482 = vmatpush1.bf16.msra.mxu0 %v885_v4  ;;  %v888_v6 = vld [vmem:[#allocation10 + $0x94] ss:$12 sps:$4 sm:$0xff]   ;;  %v891_v8 = vld [vmem:[#allocation10 + $0x90] ss:$12 sps:$4 sm:$0xff]   ;;  %v897_v12 = vld [vmem:[#allocation10 + $0x78] ss:$12 sps:$4 sm:$0xff]  }
  0x54   :  { %245 = vmatprep.subr.bf16.mxu1 %v886_v5  ;;  %483 = vmatprep.subr.bf16.mxu0 %v888_v6  ;;  %v892_v9 = vld [vmem:[#allocation8 + $0x24] ss:$16 sps:$4 sm:$0xff]   ;;  %v896_v11 = vld [vmem:[#allocation8 + $0x20] ss:$16 sps:$4 sm:$0xff]   ;;  %v906_v17 = vld [vmem:[#allocation8 + $0x6c] ss:$16 sps:$4 sm:$0xff]   ;;  %v131_v5 = vlaneseq }
  0x55   :  { %v898_v13 = vld [vmem:[#allocation8 + $0x4] ss:$16 sps:$4 sm:$0xff]   ;;  %v902_v15 = vld [vmem:[#allocation8] ss:$16 sps:$4 sm:$0xff]   ;;  %v907_v18 = vld [vmem:[#allocation10 + $0x4c] ss:$12 sps:$4 sm:$0xff]  }
  0x56   :  { %v900_v14 = vld [vmem:[#allocation10 + $0x64] ss:$12 sps:$4 sm:$0xff]   ;;  %v903_v16 = vld [vmem:[#allocation10 + $0x60] ss:$12 sps:$4 sm:$0xff]   ;;  %v904_v20 = vld [vmem:[#allocation8 + $0x68] ss:$16 sps:$4 sm:$0xff]  }
  0x57   :  { %246 = vmatpush1.bf16.msra.mxu1 %v890_v7  ;;  %484 = vmatpush1.bf16.msra.mxu0 %v891_v8  ;;  %vm231_vm0 = vcmask 523264   ;;  %v909_v22 = vld [vmem:[#allocation10 + $0x48] ss:$12 sps:$4 sm:$0xff]   ;;  %v912_v23 = vld [vmem:[#allocation8 + $0x4c] ss:$16 sps:$4 sm:$0xff]   ;;  %v317_v32 = vld [vmem:[#allocation5] sm:$0xff] }
  0x58   :  { %247 = vmatprep.subr.bf16.mxu1 %v892_v9  ;;  %485 = vmatprep.subr.bf16.mxu0 %v894_v10  ;;  %v913_v24 = vld [vmem:[#allocation10 + $0x34] ss:$12 sps:$4 sm:$0xff]   ;;  %v910_v25 = vld [vmem:[#allocation8 + $0x48] ss:$16 sps:$4 sm:$0xff]   ;;  %v915_v26 = vld [vmem:[#allocation10 + $0x30] ss:$12 sps:$4 sm:$0xff]  }
  0x59   :  { %v918_v27 = vld [vmem:[#allocation8 + $0x2c] ss:$16 sps:$4 sm:$0xff]   ;;  %v916_v29 = vld [vmem:[#allocation8 + $0x28] ss:$16 sps:$4 sm:$0xff]   ;;  %v925_v34 = vld [vmem:[#allocation10 + $0x4] ss:$12 sps:$4 sm:$0xff]  }
  0x5a   :  { %v919_v28 = vld [vmem:[#allocation10 + $0x1c] ss:$12 sps:$4 sm:$0xff]   ;;  %v921_v30 = vld [vmem:[#allocation10 + $0x18] ss:$12 sps:$4 sm:$0xff]   ;;  %v927_v37 = vld [vmem:[#allocation10] ss:$12 sps:$4 sm:$0xff]  }
  0x5b   :  { %248 = vmatpush1.bf16.msra.mxu1 %v896_v11  ;;  %486 = vmatpush1.bf16.msra.mxu0 %v897_v12  ;;  %v924_v31 = vld [vmem:[#allocation8 + $0xc] ss:$16 sps:$4 sm:$0xff]   ;;  %v922_v35 = vld [vmem:[#allocation8 + $0x8] ss:$16 sps:$4 sm:$0xff]   ;;  %v1151_v41 = vmov 0.0   ;;  %v931_v43 = vld [vmem:[#allocation11 + $0x30] sm:$0xff]  }
  0x5c   :  { %249 = vmatprep.subr.bf16.mxu1 %v898_v13  ;;  %487 = vmatprep.subr.bf16.mxu0 %v900_v14  ;;  %v318_v33 = vld [vmem:[#allocation5 + $0x8] sm:$0xff]  ;;  %v928_v39 = vld [vmem:[#allocation10 + $0xb0] ss:$12 sps:$4 sm:$0xff]   ;;  %v930_v42 = vld [vmem:[#allocation10 + $0x98] ss:$12 sps:$4 sm:$0xff]   ;;  %vm1152_vm1 = vmmov 0  }
  0x5d   :  { %v319_v36 = vadd.f32 %v318_v33, %v317_v32  ;;  %v929_v40 = vld [vmem:[#allocation11 + $0x38] sm:$0xff]   ;;  %v932_v44 = vld [vmem:[#allocation10 + $0x80] ss:$12 sps:$4 sm:$0xff]   ;;  %v934_v46 = vld [vmem:[#allocation10 + $0x68] ss:$12 sps:$4 sm:$0xff]   ;;  %v132_v8 = vshrl.u32 %v131_v5, 7 }
  0x5e   :  { %v933_v45 = vld [vmem:[#allocation11 + $0x28] sm:$0xff]   ;;  %v935_v47 = vld [vmem:[#allocation11 + $0x20] sm:$0xff]   ;;  %v936_v48 = vld [vmem:[#allocation10 + $0x50] ss:$12 sps:$4 sm:$0xff]  }
  0x5f   :  { %250 = vmatpush1.bf16.msra.mxu1 %v902_v15  ;;  %488 = vmatpush1.bf16.msra.mxu0 %v903_v16  ;;  %v320_v38 = vpack.c.bf16 %v319_v36, %v319_v36  ;;  %v937_v49 = vld [vmem:[#allocation11 + $0x18] sm:$0xff]   ;;  %v939_v51 = vld [vmem:[#allocation11 + $0x10] sm:$0xff]   ;;  %v940_v52 = vld [vmem:[#allocation10 + $0x20] ss:$12 sps:$4 sm:$0xff]   ;;  %v133_v9 = vsub.s32 0, %v132_v8  ;;  %v145_v13 = vsub.s32 3, %v132_v8 }
  0x60   :  { %284 = vmatprep.subr.bf16.mxu1 %v906_v17  ;;  %489 = vmatprep.subr.bf16.mxu0 %v907_v18  ;;  %v938_v50 = vld [vmem:[#allocation10 + $0x38] ss:$12 sps:$4 sm:$0xff]   ;;  %v941_v53 = vld [vmem:[#allocation11 + $0x8] sm:$0xff]   ;;  %v579_v56 = vld [vmem:[#allocation7] sm:$0xff]  ;;  %v141_v33 = vsub.s32 2, %v132_v8 }
  0x61   :  { %v942_v54 = vld [vmem:[#allocation10 + $0x8] ss:$12 sps:$4 sm:$0xff]   ;;  %v943_v55 = vld [vmem:[#allocation11] sm:$0xff]   ;;  %v580_v57 = vld [vmem:[#allocation7 + $0x8] sm:$0xff] }
  0x62   :  { %763 = vmatmul.mubr.msk.bf16.vlgmr.msra.gmra.mxu1 %vm231_vm0, %v112_v21  ;;  %v802_v58 = vpack.c.bf16 %v580_v57, %v579_v56  ;;  %v129_v10 = vld [vmem:[%s1241_s6] sm:$0xf]  ;;  %s1153_s6 = smov [#allocation13]  }
  0x63   :  { %285 = vmatpush1.bf16.msra.mxu1 %v904_v20  ;;  %490 = vmatpush1.bf16.msra.mxu0 %v909_v22  ;;  %v134_v11 = vrot.slane %v129_v10, %v133_v9  ;;  %v146_v15 = vrot.slane %v129_v10, %v145_v13  ;;  %v137_v20 = vsub.s32 1, %v132_v8  ;;  %s721_s17 = sshll.u32 %s1153_s6, 4  ;;  %s722_s17 = int_to_ptr.vmem [resolvable:$true] %s721_s17 }
  0x64   :  { %286 = vmatprep.subr.bf16.mxu1 %v912_v23  ;;  %491 = vmatprep.subr.bf16.mxu0 %v913_v24  ;;  %s1084_s18 = scalar_lea.vmem %s722_s17, 128  ;;  %p1089_p3 = scmp.lt.s32.totalorder %s722_s17, %s722_s17 }
  0x65   :  { %308 = vmatprep.mubr.bf16.mxu1 %v1150_v0  ;;  %p1085_p2 = scmp.ne.s32.totalorder %s722_s17, %s1084_s18  ;;  %p1090_p4 = scmp.lt.s32.totalorder %s1084_s18, %s1084_s18 }
  0x67   :  { %287 = vmatpush1.bf16.msra.mxu1 %v910_v25  ;;  %492 = vmatpush1.bf16.msra.mxu0 %v915_v26  ;;  %p1091_p5 = por %p1090_p4, %p1089_p3 }
  0x68   :  { %288 = vmatprep.subr.bf16.mxu1 %v918_v27  ;;  %493 = vmatprep.subr.bf16.mxu0 %v919_v28  ;;  %v138_v27 = vrot.slane %v129_v10, %v137_v20 }
  0x69   :  { %p1092_p6 = pnand %p1091_p5, %p1085_p2 }
  0x6b   :  { %289 = vmatpush1.bf16.msra.mxu1 %v916_v29  ;;  %494 = vmatpush1.bf16.msra.mxu0 %v921_v30 }
  0x6c   :  { %290 = vmatprep.subr.bf16.mxu1 %v924_v31  ;;  %495 = vmatprep.subr.bf16.mxu0 %v925_v34 }
  0x6f   :  { %291 = vmatpush1.bf16.msra.mxu1 %v922_v35  ;;  %496 = vmatpush1.bf16.msra.mxu0 %v927_v37  ;;  %v142_v35 = vrot.slane %v129_v10, %v141_v33 }
  0x70   :  { %821 = vmatprep.subr.bf16.mxu1 %v1151_v41  ;;  %841 = vmatprep.subr.bf16.mxu0 %v1151_v41 }
  0x72   :  { %514 = vmatmul.mubr.bf16.vlgmr.msra.gmra.mxu0 %v320_v38  ;;  %764 = vmatmul.mubr.msk.bf16.vlgmr.msra.gmra.mxu1 %vm231_vm0, %v112_v21 }
  0x73   :  { %822 = vmatpush3.bf16.msra.mxu1 %v928_v39  ;;  %842 = vmatpush3.bf16.msra.mxu0 %v929_v40 }
  0x74   :  { %823 = vmatprep.subr.bf16.mxu1 %v1151_v41  ;;  %843 = vmatprep.subr.bf16.mxu0 %v1151_v41 }
  0x75   :  { %837 = vmatprep.mubr.msk.bf16.mxu1 %vm1152_vm1, %v1151_v41  ;;  %857 = vmatprep.mubr.msk.bf16.mxu0 %vm1152_vm1, %v1151_v41 }
  0x77   :  { %824 = vmatpush3.bf16.msra.mxu1 %v930_v42  ;;  %844 = vmatpush3.bf16.msra.mxu0 %v931_v43 }
  0x78   :  { %825 = vmatprep.subr.bf16.mxu1 %v1151_v41  ;;  %845 = vmatprep.subr.bf16.mxu0 %v1151_v41 }
  0x7b   :  { %826 = vmatpush3.bf16.msra.mxu1 %v932_v44  ;;  %846 = vmatpush3.bf16.msra.mxu0 %v933_v45 }
  0x7c   :  { %827 = vmatprep.subr.bf16.mxu1 %v1151_v41  ;;  %847 = vmatprep.subr.bf16.mxu0 %v1151_v41 }
  0x7f   :  { %828 = vmatpush3.bf16.msra.mxu1 %v934_v46  ;;  %848 = vmatpush3.bf16.msra.mxu0 %v935_v47 }
  0x80   :  { %829 = vmatprep.subr.bf16.mxu1 %v1151_v41  ;;  %849 = vmatprep.subr.bf16.mxu0 %v1151_v41 }
  0x83   :  { %830 = vmatpush3.bf16.msra.mxu1 %v936_v48  ;;  %850 = vmatpush3.bf16.msra.mxu0 %v937_v49 }
  0x84   :  { %831 = vmatprep.subr.bf16.mxu1 %v1151_v41  ;;  %851 = vmatprep.subr.bf16.mxu0 %v1151_v41 }
  0x87   :  { %832 = vmatpush3.bf16.msra.mxu1 %v938_v50  ;;  %852 = vmatpush3.bf16.msra.mxu0 %v939_v51 }
  0x88   :  { %833 = vmatprep.subr.bf16.mxu1 %v1151_v41  ;;  %853 = vmatprep.subr.bf16.mxu0 %v1151_v41 }
  0x8b   :  { %834 = vmatpush3.bf16.msra.mxu1 %v940_v52  ;;  %854 = vmatpush3.bf16.msra.mxu0 %v941_v53 }
  0x8c   :  { %835 = vmatprep.subr.bf16.mxu1 %v1151_v41  ;;  %855 = vmatprep.subr.bf16.mxu0 %v1151_v41 }
  0x8f   :  { %836 = vmatpush3.bf16.msra.mxu1 %v942_v54  ;;  %856 = vmatpush3.bf16.msra.mxu0 %v943_v55 }
  0x92   :  { %838 = vmatmul.mubr.bf16.vlgmr.msra.gmra.mxu1 %v320_v38  ;;  %858 = vmatmul.mubr.bf16.vlgmr.msra.gmra.mxu0 %v802_v58 }
 0x122   :  { %v269_v59 = vpop.f32.mrf.mxu1 }
 0x123   :  { %v270_v12 = vadd.f32 %v269_v59, %v134_v11 }
 0x124   :  { %v271_v60 = vpop.f32.mrf.mxu1 }
 0x125   :  { %v272_v32 = vadd.f32 %v271_v60, %v138_v27 }
 0x126   :  { %v273_v61 = vpop.f32.mrf.mxu1 }
 0x128   :  { %v274_v62 = vpop.f32.mrf.mxu1 }
 0x132   :  { %v515_v63 = vpop.f32.mrf.mxu0  ;;  %v310_v0 = vpop.f32.mrf.mxu1 }
 0x133   :  { %v562_v14 = vadd.f32 %v515_v63, %v270_v12  ;;  %v311_v38 = vadd.f32 %v310_v0, %v142_v35 }
 0x134   :  { %v517_v1 = vpop.f32.mrf.mxu0  ;;  %v312_v2 = vpop.f32.mrf.mxu1 }
 0x135   :  { %v789_v16 = vmul.f32 -1.442695, %v562_v14  ;;  %v313_v17 = vadd.f32 %v312_v2, %v146_v15  ;;  %v563_v34 = vadd.f32 %v517_v1, %v272_v32 }
 0x136   :  { %v519_v3 = vpop.f32.mrf.mxu0  ;;  %v314_v4 = vpop.f32.mrf.mxu1 }
 0x137   :  { %944 = vpow2.f32 %v789_v16  ;;  %v790_v37 = vmul.f32 -1.442695, %v563_v34 }
 0x138   :  { %v520_v6 = vpop.f32.mrf.mxu0  ;;  %v315_v7 = vpop.f32.mrf.mxu1 }
 0x144   :  { %v945_v36 = vpop.eup %944 }
 0x145   :  { %v568_v40 = vadd.f32 1.0, %v945_v36 }
 0x152   :  { %v556_v18 = vpop.f32.mrf.mxu1  ;;  %v687_v19 = vpop.f32.mrf.mxu0 }
 0x153   :  { %v694_v21 = vmul.f32 %v687_v19, %v313_v17  ;;  %v564_v41 = vadd.f32 %v556_v18, %v311_v38 }
 0x154   :  { %v859_v22 = vpop.f32.mrf.mxu0  ;;  %v839_v23 = vpop.f32.mrf.mxu1 }
 0x155   :  { %v800_v24 = vmul.f32 -1.442695, %v694_v21 }
 0x156   :  { %v690_v25 = vpop.f32.mrf.mxu0  ;;  %v559_v26 = vpop.f32.mrf.mxu1 }
 0x157   :  { %946 = vpow2.f32 %v800_v24  ;;  %v695_v28 = vmul.f32 %v690_v25, %v313_v17 }
 0x158   :  { %v860_v29 = vpop.f32.mrf.mxu0  ;;  %v840_v30 = vpop.f32.mrf.mxu1 }
 0x159   :  { %v801_v31 = vmul.f32 -1.442695, %v695_v28 }
 0x15b   :  { %948 = vpow2.f32 %v801_v31 }
 0x15c   :  { %950 = vpow2.f32 %v790_v37 }
 0x15d   :  { %952 = vrcp.f32 %v568_v40 }
 0x15e   :  { %954 = vtanh.f32 %v564_v41 }
 0x164   :  { %v947_v39 = vpop.eup %946 }
 0x165   :  { %v702_v42 = vadd.f32 1.0, %v947_v39 }
 0x167   :  { %956 = vrcp.f32 %v702_v42 }
 0x168   :  { %v949_v43 = vpop.eup %948 }
 0x169   :  { %v703_v44 = vadd.f32 1.0, %v949_v43  ;;  %v951_v45 = vpop.eup %950 }
 0x16a   :  { %v953_v46 = vpop.eup %952  ;;  %v574_v50 = vadd.f32 1.0, %v951_v45 }
 0x16b   :  { %958 = vrcp.f32 %v703_v44  ;;  %v955_v47 = vpop.eup %954 }
 0x16c   :  { %v578_v51 = vmul.f32 %v955_v47, %v953_v46  ;;  %960 = vrcp.f32 %v574_v50 }
 0x174   :  { %v957_v48 = vpop.eup %956 }
 0x178   :  { %v959_v49 = vpop.eup %958 }
 0x179   :  { %v708_v52 = vadd.f32 %v959_v49, %v957_v48 }
 0x17b   :  { %v709_v53 = vadd.f32 %v708_v52, %v578_v51 }
 0x17d   :  { %962 = vtanh.f32 %v709_v53  ;;  %712 = vst [vmem:[#allocation13] sm:$0xff] %v709_v53 }
 0x17e   :  { %1095 = shalt.err (!%p1092_p6)
}
 0x17f   :  { %724 = dma.vmem_to_hbm [thread:$0]  %s722_s17, 128, %s1242_s7, [#allocation4]   ;;  %v961_v54 = vpop.eup %960 }
 0x180   :  { %s1154_s21 = smov [#allocation14]  }
 0x181   :  { %s731_s1 = sshll.u32 %s1154_s21, 4  ;;  %s732_s1 = int_to_ptr.vmem [resolvable:$true] %s731_s1 }
 0x182   :  { %s1104_s22 = scalar_lea.vmem %s732_s1, 64  ;;  %p1109_p8 = scmp.lt.s32.totalorder %s732_s1, %s732_s1 }
 0x183   :  { %p1105_p7 = scmp.ne.s32.totalorder %s732_s1, %s1104_s22  ;;  %p1110_p9 = scmp.lt.s32.totalorder %s1104_s22, %s1104_s22 }
 0x185   :  { %p1111_p10 = por %p1110_p9, %p1109_p8 }
 0x187   :  { %p1112_p11 = pnand %p1111_p10, %p1105_p7 }
 0x18a   :  { %v963_v55 = vpop.eup %962 }
 0x18b   :  { %v711_v56 = vmul.f32 %v963_v55, %v961_v54 }
 0x18d   :  { %v713_v57 = vpack.c.bf16 %v711_v56, %v711_v56 }
 0x18f   :  { %714 = vst [vmem:[#allocation14] sm:$0xf] %v713_v57 }
 0x190   :  { %1115 = shalt.err (!%p1112_p11)
}
 0x191   :  { %734 = dma.vmem_to_hbm [thread:$0]  %s732_s1, 64, %s1243_s8, [#allocation15]  }
 0x192   :  { %1132 = dma.done.wait [#allocation4], 128  }
 0x193   :  { %1133 = vsyncadd [#allocation4], 4294967168 }
 0x194   :  { %1134 = dma.done.wait [#allocation15], 64  }
 0x195   :  { %1135 = vsyncadd [#allocation15], 4294967232 }
 0x196   :  { %741 = vsyncpa [#allocation3], 1 }
 0x197   :  { %742 = vsyncpa [#allocation6], 1 }
 0x198   :  { %743 = vsyncpa [#allocation9], 1 }
 0x199   :  { %744 = vsyncpa [#allocation12], 1 }
 0x19a   :  { %745 = vsyncpa [#allocation4], 1 }
 0x19b   :  { %746 = vsyncpa [#allocation15], 1 }

</bundles_post_ra>
